<compile_context>
chip_gen: v7x
topology: tpu7x:2x2x1
jax: 0.10.0
libtpu: 0.0.40
codegen_flags: <defaults>
</compile_context>

<pallas_src>
import jax
import jax.numpy as jnp
import numpy as np
from jax.experimental import pallas as pl
from jax.experimental.pallas import tpu as pltpu


def _round_up(a: int, m: int) -> int:
    return (a + m - 1) // m * m


def build_moving_avg_matrix(seq_len: int, kernel_size: int) -> jnp.ndarray:
    """A[t, s] such that (A @ x)[t] == edge-replicated moving average of x at t.

    Matches moving_avg(kernel_size, stride=1): replicate (k-1)//2 samples at
    each end, then AvgPool1d(kernel_size, stride=1). Requires odd kernel_size
    (even sizes change the pooled length in the PyTorch module).
    """
    assert kernel_size % 2 == 1, "DLinear fold assumes an odd kernel_size"
    pad = (kernel_size - 1) // 2
    t = np.arange(seq_len)[:, None]                 # (L, 1)
    j = np.arange(kernel_size)[None, :]             # (1, K)
    src = np.clip(t + j - pad, 0, seq_len - 1)      # (L, K) source indices
    A = np.zeros((seq_len, seq_len), dtype=np.float32)
    np.add.at(A,
              (np.repeat(np.arange(seq_len), kernel_size), src.reshape(-1)),
              1.0 / kernel_size)
    return jnp.asarray(A)


def dlinear_kernel(x_ref, w_ref, b_ref, o_ref):
    # One MXU matmul per grid step: (P, L) @ (L, lane_tile), f32 accumulation.
    # Bias is (P, 1) and broadcasts across the lane dimension (VPU add).
    out = jnp.dot(w_ref[...], x_ref[...], preferred_element_type=jnp.float32)
    o_ref[...] = (out + b_ref[...]).astype(o_ref.dtype)


def dlinear_forward(x, w_seasonal, w_trend, b_seasonal, b_trend, kernel_size,
                    *, compute_dtype=None, lane_tile_max=512):
    """DLinear forward. x: (B, L, C) -> (B, P, C)."""
    B, L, C = x.shape
    P = w_seasonal.shape[0]
    out_dtype = x.dtype

    # ---- host-side parameter fold (pure setup, runs once under jit) ----
    A = build_moving_avg_matrix(L, kernel_size)                       # (L, L)
    w_s32 = w_seasonal.astype(jnp.float32)
    w_t32 = w_trend.astype(jnp.float32)
    w_eff = w_s32 + jnp.dot(w_t32 - w_s32, A)                         # (P, L)
    b_eff = (b_seasonal + b_trend).astype(jnp.float32).reshape(P, 1)  # (P, 1)

    # ---- lane-dense data layout: fold (B, C) into the lane dimension ----
    N = B * C
    x2 = jnp.transpose(x, (1, 0, 2)).reshape(L, N)    # column j = (b*C + c)

    lane_tile = min(lane_tile_max, _round_up(N, 128))
    n_pad = _round_up(N, lane_tile)
    if n_pad != N:
        x2 = jnp.pad(x2, ((0, 0), (0, n_pad - N)))

    if compute_dtype is not None:                     # bf16 MXU operands on v6e/v7x
        x2 = x2.astype(compute_dtype)
        w_eff = w_eff.astype(compute_dtype)

    grid = (n_pad // lane_tile,)

    cost = pl.CostEstimate(
        flops=2 * P * L * n_pad,
        transcendentals=0,
        bytes_accessed=(x2.size * x2.dtype.itemsize
                        + w_eff.size * w_eff.dtype.itemsize
                        + b_eff.size * b_eff.dtype.itemsize
                        + P * n_pad * jnp.dtype(out_dtype).itemsize),
    )

    out2 = pl.pallas_call(
        dlinear_kernel,
        out_shape=jax.ShapeDtypeStruct((P, n_pad), out_dtype),
        grid_spec=pltpu.PrefetchScalarGridSpec(
            num_scalar_prefetch=0,
            grid=grid,
            in_specs=[
                # x tile: (L, lane_tile), walks the lane dimension.
                pl.BlockSpec((L, lane_tile), lambda n: (0, n)),
                # Folded weight / bias: constant block index -> fetched once,
                # not re-DMA'd per grid step. (Could add pipeline_mode=
                # pl.Buffered(1) to drop the second VMEM copy if headroom is
                # tight on v7x; unnecessary at these weight sizes.)
                pl.BlockSpec((P, L), lambda n: (0, 0)),
                pl.BlockSpec((P, 1), lambda n: (0, 0)),
            ],
            out_specs=pl.BlockSpec((P, lane_tile), lambda n: (0, n)),
        ),
        compiler_params=pltpu.CompilerParams(
            dimension_semantics=("parallel",)),
        cost_estimate=cost,
    )(x2, w_eff, b_eff)

    out2 = out2[:, :N]                                # strip lane padding
    return jnp.transpose(out2.reshape(P, B, C), (1, 0, 2))   # (B, P, C)


def dlinear_reference(x, w_seasonal, w_trend, b_seasonal, b_trend, kernel_size):
    """Pure-JAX reference that mirrors the PyTorch forward step-by-step."""
    pad = (kernel_size - 1) // 2
    L = x.shape[1]
    front = jnp.repeat(x[:, :1, :], pad, axis=1)
    end = jnp.repeat(x[:, -1:, :], pad, axis=1)
    xp = jnp.concatenate([front, x, end], axis=1)             # (B, L+2p, C)
    windows = jnp.stack([xp[:, i:i + L, :] for i in range(kernel_size)], axis=0)
    trend = jnp.mean(windows, axis=0)                         # (B, L, C)
    res = x - trend
    out = (jnp.einsum('pl,blc->bpc', w_seasonal, res)
           + jnp.einsum('pl,blc->bpc', w_trend, trend)
           + (b_seasonal + b_trend)[None, :, None])
    return out                                                # (B, P, C)


if __name__ == "__main__":
    # Small shapes consistent with the module.
    B, L, C = 2, 16, 8          # batch, seq_len, channels
    P = 8                       # pred_len
    kernel_size = 5             # odd, as typical for DLinear

    key = jax.random.PRNGKey(0)
    kx, ks, kt, kbs, kbt = jax.random.split(key, 5)

    x = jax.random.normal(kx, (B, L, C), dtype=jnp.float32)

    # nn.Linear(seq_len, pred_len)-shaped params, U(-1/sqrt(L), 1/sqrt(L)).
    bound = 1.0 / np.sqrt(L)
    w_seasonal = jax.random.uniform(ks, (P, L), jnp.float32, -bound, bound)
    w_trend    = jax.random.uniform(kt, (P, L), jnp.float32, -bound, bound)
    b_seasonal = jax.random.uniform(kbs, (P,), jnp.float32, -bound, bound)
    b_trend    = jax.random.uniform(kbt, (P,), jnp.float32, -bound, bound)

    ref = dlinear_reference(x, w_seasonal, w_trend, b_seasonal, b_trend,
                            kernel_size)

    # f32 path (default; v5e-friendly): tight tolerance.
    out = dlinear_forward(x, w_seasonal, w_trend, b_seasonal, b_trend,
                          kernel_size)
    out = jax.block_until_ready(out)
    assert out.shape == (B, P, C)
    np.testing.assert_allclose(np.asarray(out), np.asarray(ref),
                               rtol=1e-5, atol=1e-5)

    # bf16 MXU-operand path (v6e/v7x): f32 accumulation, looser tolerance.
    out_bf16 = dlinear_forward(x, w_seasonal, w_trend, b_seasonal, b_trend,
                               kernel_size, compute_dtype=jnp.bfloat16)
    out_bf16 = jax.block_until_ready(out_bf16)
    np.testing.assert_allclose(np.asarray(out_bf16).astype(np.float32),
                               np.asarray(ref), rtol=2e-2, atol=2e-2)

    print("KERNEL_OK")
</pallas_src>

<mosaic_0001>
module attributes {stable_mosaic.version = 11 : i64} {
  func.func @dlinear_kernel(%arg0: i32, %arg1: memref<16x128xf32, #tpu.memory_space<vmem>>, %arg2: memref<8x16xf32, #tpu.memory_space<vmem>>, %arg3: memref<8x1xf32, #tpu.memory_space<vmem>>, %arg4: memref<8x128xf32, #tpu.memory_space<vmem>>) attributes {dimension_semantics = [#tpu.dimension_semantics<parallel>], iteration_bounds = array<i64: 1>, scalar_prefetch = 0 : i64, scratch_operands = 0 : i64, tpu.core_type = #tpu.core_type<tc>, window_params = [{transform_indices = @transform_0, window_bounds = array<i64: 16, 128>}, {pipeline_mode = #tpu.pipeline_mode<synchronous>, transform_indices = @transform_1, window_bounds = array<i64: 8, 16>}, {pipeline_mode = #tpu.pipeline_mode<synchronous>, transform_indices = @transform_2, window_bounds = array<i64: 8, 1>}, {transform_indices = @transform_3, window_bounds = array<i64: 8, 128>}]} {
    %c0 = arith.constant 0 : index
    %c0_0 = arith.constant 0 : index
    %0 = vector.load %arg2[%c0, %c0_0] : memref<8x16xf32, #tpu.memory_space<vmem>>, vector<8x16xf32>
    %c0_1 = arith.constant 0 : index
    %c0_2 = arith.constant 0 : index
    %1 = vector.load %arg1[%c0_1, %c0_2] : memref<16x128xf32, #tpu.memory_space<vmem>>, vector<16x128xf32>
    %cst = arith.constant dense<0.000000e+00> : vector<8x128xf32>
    %2 = tpu.matmul %0, %1, %cst {dimension_numbers = #tpu.dot_dimension_numbers<[1], [0], [0], [1], [0, 0, 1, 1], [], []>} : vector<8x16xf32>, vector<16x128xf32>, vector<8x128xf32> -> vector<8x128xf32>
    %c0_3 = arith.constant 0 : index
    %c0_4 = arith.constant 0 : index
    %3 = vector.load %arg3[%c0_3, %c0_4] : memref<8x1xf32, #tpu.memory_space<vmem>>, vector<8x1xf32>
    %4 = vector.broadcast %3 : vector<8x1xf32> to vector<8x128xf32>
    %5 = arith.addf %2, %4 : vector<8x128xf32>
    %c0_5 = arith.constant 0 : index
    %c0_6 = arith.constant 0 : index
    %6 = vector.load %arg4[%c0_5, %c0_6] : memref<8x128xf32, #tpu.memory_space<vmem>>, vector<8x128xf32>
    tpu.vector_store %arg4[%c0_5, %c0_6], %5 {strides = array<i32>} : memref<8x128xf32, #tpu.memory_space<vmem>>, vector<8x128xf32>,
    return
  }
  func.func @transform_0(%arg0: i32) -> (i32, i32) {
    %c0_i32 = arith.constant 0 : i32
    %c0_i32_0 = arith.constant 0 : i32
    return %c0_i32, %arg0 : i32, i32
  }
  func.func @transform_1(%arg0: i32) -> (i32, i32) {
    %c0_i32 = arith.constant 0 : i32
    %c0_i32_0 = arith.constant 0 : i32
    %c0_i32_1 = arith.constant 0 : i32
    return %c0_i32, %c0_i32_0 : i32, i32
  }
  func.func @transform_2(%arg0: i32) -> (i32, i32) {
    %c0_i32 = arith.constant 0 : i32
    %c0_i32_0 = arith.constant 0 : i32
    %c0_i32_1 = arith.constant 0 : i32
    return %c0_i32, %c0_i32_0 : i32, i32
  }
  func.func @transform_3(%arg0: i32) -> (i32, i32) {
    %c0_i32 = arith.constant 0 : i32
    %c0_i32_0 = arith.constant 0 : i32
    return %c0_i32, %arg0 : i32, i32
  }
}

</mosaic_0001>

<bundles_post_ra>
// kernel: tpu_custom_call.1
= control target key start
LH: loop header
LB: loop body
LE: loop exit
PB: predicated region body
PF: predicated region fallthrough
CT: control target
= control target key end

     0   :  { %8 = vsyncpa [#allocation3], 0  ;;  %s257_s0 = inlined_call_operand.hbm [shape: f32[16,128], index: 0, kind: input, shape index: {}]   ;;  %s258_s1 = inlined_call_operand.vmem [shape: f32[8,16], index: 1, kind: input, shape index: {}]   ;;  %s259_s2 = inlined_call_operand.vmem [shape: f32[8,1], index: 2, kind: input, shape index: {}]   ;;  %s260_s3 = inlined_call_operand.hbm [shape: f32[8,128], index: 3, kind: output, shape index: {}]  }
   0x1   :  { %9 = vsyncpa [#allocation4], 0  ;;  %s199_s12 = smov [#allocation2]   ;;  %s151_s16 = scalar_lea.hbm %s257_s0, 256 }
   0x2   :  { %s15_s13 = sshll.u32 %s199_s12, 4  ;;  %p152_p0 = scmp.ne.s32.totalorder %s257_s0, %s151_s16  ;;  %s16_s13 = int_to_ptr.vmem [resolvable:$true] %s15_s13 }
   0x3   :  { %p155_p1 = scmp.lt.u32.totalorder %s151_s16, %s257_s0 }
   0x5   :  { %p157_p2 = pnand %p155_p1, %p152_p0 }
   0x7   :  { %160 = shalt.err (!%p157_p2)
}
   0x8   :  { %s161_s21 = scalar_lea.vmem %s16_s13, 256  ;;  %p166_p4 = scmp.lt.s32.totalorder %s16_s13, %s16_s13 }
   0x9   :  { %p162_p3 = scmp.ne.s32.totalorder %s16_s13, %s161_s21  ;;  %p167_p5 = scmp.lt.s32.totalorder %s161_s21, %s161_s21 }
   0xb   :  { %p168_p6 = por %p167_p5, %p166_p4 }
   0xd   :  { %p169_p7 = pnand %p168_p6, %p162_p3 }
   0xf   :  { %172 = shalt.err (!%p169_p7)
}
  0x10   :  { %s200_s22 = smov 128   ;;  %s201_s23 = smov 8  }
  0x11   :  { %21 = dma.hbm_to_vmem [thread:$0]  %s257_s0, 256, %s16_s13, [#allocation3], %s200_s22, %s200_s22, %s201_s23  }
  0x12   :  { %195 = dma.done.wait [#allocation3], 256  }
  0x13   :  { %196 = vsyncadd [#allocation3], 4294967040  ;;  %v202_v0 = vmov 0.0|0.0   ;;  %vm203_vm0 = vmmov 0   ;;  %v204_v1 = vmov 0.0   ;;  %v205_v2 = vmov 0  }
  0x14   :  { %139 = vmatprep.subr.bf16.mxu0 %v202_v0  ;;  %136 = vmatprep.mubr.msk.f32.mxu0 %vm203_vm0, %v204_v1  ;;  %v30_v3 = vld [vmem:[#allocation2] sm:$0xff]  ;;  %v31_v4 = vld [vmem:[#allocation2 + $0x8] sm:$0xff]  ;;  %vm38_vm1 = vcmask 130048   ;;  %s206_s29 = smov [#allocation5]  }
  0x15   :  { %150 = vset.pattern.permute.xlu0 %v205_v2  ;;  %v140_v5 = vpack.c.bf16 %v31_v4, %v30_v3  ;;  %v32_v6 = vld [vmem:[%s259_s2] sm:$0xff]  ;;  %s119_s30 = sshll.u32 %s206_s29, 4  ;;  %s120_s30 = int_to_ptr.vmem [resolvable:$true] %s119_s30 }
  0x16   :  { %35 = vperm.xlu0 %150, %v32_v6   ;;  %v29_v7 = vld [vmem:[%s258_s1] sm:$0xff]  ;;  %s173_s4 = scalar_lea.vmem %s120_s30, 128  ;;  %p178_p9 = scmp.lt.s32.totalorder %s120_s30, %s120_s30 }
  0x17   :  { %141 = vmatpush3.bf16.msra.mxu0 %v140_v5  ;;  %p174_p8 = scmp.ne.s32.totalorder %s120_s30, %s173_s4  ;;  %p179_p10 = scmp.lt.s32.totalorder %s173_s4, %s173_s4 }
  0x19   :  { %p180_p11 = por %p179_p10, %p178_p9 }
  0x1a   :  { %137 = vmatmul.mubr.msk.f32.vlgmr.msra.gmra.mrb[0].mxu0 %vm38_vm1, %v29_v7 }
  0x1b   :  { %p181_p12 = pnand %p180_p11, %p174_p8 }
  0x95   :  { %v36_v8 = vpop.permute.xlu0 %35 }
  0xed   :  { %v108_v9 = vpop.f32.mrb[0].mxu0 }
  0xee   :  { %v109_v10 = vadd.f32 %v108_v9, %v36_v8  ;;  %v138_v11 = vpop.f32.mrb[1].mxu0 }
  0xf0   :  { %112 = vst [vmem:[#allocation5] sm:$0xff] %v109_v10 }
  0xf1   :  { %184 = shalt.err (!%p181_p12)
}
  0xf2   :  { %s185_s1 = scalar_lea.hbm %s260_s3, 128 }
  0xf3   :  { %p186_p13 = scmp.ne.s32.totalorder %s260_s3, %s185_s1  ;;  %p189_p0 = scmp.lt.u32.totalorder %s185_s1, %s260_s3 }
  0xf5   :  { %p191_p1 = pnand %p189_p0, %p186_p13 }
  0xf7   :  { %194 = shalt.err (!%p191_p1)
}
  0xf8   :  { %122 = dma.vmem_to_hbm [thread:$0]  %s120_s30, 128, %s260_s3, [#allocation4]  }
  0xf9   :  { %197 = dma.done.wait [#allocation4], 128  }
  0xfa   :  { %198 = vsyncadd [#allocation4], 4294967168 }
  0xfb   :  { %126 = vsyncpa [#allocation3], 1 }
  0xfc   :  { %127 = vsyncpa [#allocation4], 1 }

</bundles_post_ra>
